<compile_context>
chip_gen: v5e
topology: v5e:2x2
jax: 0.10.0
libtpu: 0.0.40
codegen_flags: <defaults>
</compile_context>

<pallas_src>
import functools

import jax
import jax.numpy as jnp
from jax import lax
from jax.experimental import pallas as pl
from jax.experimental.pallas import tpu as pltpu


# ----------------------------------------------------------------------------- kernel
def _fused_ce_kernel(logits_ref, tgt_m_ref, tgt_s_ref, out_ref, *,
                     ignore_index, num_smooth):
    """One grid step: bb samples' logits + their master and R smoothing targets.

    logits_ref: (bb, Tp, Cp) float -- lane-dense logits block (Cp % 128 == 0,
                                      padded classes filled with -1e30)
    tgt_m_ref:  (bb, 1, Tp)  int32 -- master targets
    tgt_s_ref:  (bb, R, Tp)  int32 -- smoothing targets (R strings per sample)
    out_ref:    (1, 8, 128)  f32   -- per-step partials on sublanes 0..3:
                                      sum_master, cnt_master, sum_smooth, cnt_smooth
    """
    bb, Tp, Cp = logits_ref.shape
    rows = bb * Tp

    # Collapse to 2-D; layout-preserving because Tp % 8 == 0 and Cp is unchanged.
    logits = logits_ref[...].astype(jnp.float32).reshape(rows, Cp)

    # Numerically stable log-sum-exp, computed ONCE and reused for the master
    # target and all `num_smooth` smoothing targets (exp(-1e30 - m) == 0, so
    # padded class lanes do not perturb it).
    m = jnp.max(logits, axis=-1, keepdims=True)                      # (rows, 1)
    lse = jnp.log(jnp.sum(jnp.exp(logits - m), axis=-1, keepdims=True)) + m

    # Broadcast iota: no (rows, Cp) int32 temporary is materialized.
    col = lax.broadcasted_iota(jnp.int32, (1, Cp), 1)

    # ---- master loss: one where-select gather + one cross-lane reduce.
    t_m = tgt_m_ref[...].reshape(rows, 1)
    valid_m = (t_m != ignore_index).astype(jnp.float32)              # (rows, 1)
    gathered_m = jnp.sum(jnp.where(col == t_m, logits, 0.0),
                         axis=-1, keepdims=True)                     # (rows, 1)
    sum_m = jnp.sum((lse - gathered_m) * valid_m)
    cnt_m = jnp.sum(valid_m)

    # ---- smoothing loss: fold the R one-hot gathers into ONE weighted reduce.
    # counts[n, c] = #{r : t_r[n] == c and t_r[n] != ignore_index}, built with
    # cheap per-lane compares/adds; the only expensive class-dim reduction is
    # the single sum(logits * counts).
    counts = jnp.zeros((rows, Cp), jnp.float32)
    valid_s = jnp.zeros((rows, 1), jnp.float32)
    for r in range(num_smooth):                                      # static, small
        t_r = tgt_s_ref[:, r, :].reshape(rows, 1)
        v_r = t_r != ignore_index
        counts = counts + jnp.where((col == t_r) & v_r, 1.0, 0.0)
        valid_s = valid_s + v_r.astype(jnp.float32)
    sum_s = jnp.sum(lse * valid_s) - jnp.sum(logits * counts)
    cnt_s = jnp.sum(valid_s)

    # Per-step partials on sublanes 0..3 of a dedicated (8, 128) output tile so
    # the single grid axis stays "parallel"; the final reduction is plain JAX.
    sub = lax.broadcasted_iota(jnp.int32, (8, 128), 0)
    tile = jnp.where(sub == 0, sum_m,
           jnp.where(sub == 1, cnt_m,
           jnp.where(sub == 2, sum_s,
           jnp.where(sub == 3, cnt_s, 0.0))))
    out_ref[...] = tile[None]


# ----------------------------------------------------------------------------- chip heuristics
def _chip_defaults():
    """Chip-aware VMEM limit, minimum grid steps and input pipeline depth."""
    try:
        kind = jax.devices()[0].device_kind.lower()
    except Exception:
        kind = ""
    try:
        vmem_cap = int(pltpu.get_tpu_info().vmem_capacity_bytes)
    except Exception:
        vmem_cap = 64 * 1024 * 1024              # conservative (v7x per-core VMEM)
    # Half the physical VMEM: ~32 MiB on v7x (64 MiB chips), ~64 MiB on v5e/v6e.
    vmem_limit = max(16 * 1024 * 1024, min(vmem_cap // 2, 64 * 1024 * 1024))
    is_v5 = "v5" in kind
    min_steps = 4 if is_v5 else 2                # v5e is mem-bound: more overlap
    buffers = 3 if is_v5 else 2                  # deeper logits buffering on v5e
    return vmem_limit, min_steps, buffers


# ----------------------------------------------------------------------------- wrapper
def sequence_smooth_loss_v10(preds, target, text_smooth, *, alpha, ignore_index=0,
                             vmem_limit_bytes=None, min_grid_steps=None):
    """preds: (B, T, C) float; target: (B, T) int; text_smooth: (B*R, T) int."""
    B, T, C = preds.shape
    n_rows = text_smooth.shape[0]
    assert n_rows % B == 0, (n_rows, B)
    R = n_rows // B
    assert R >= 1

    auto_limit, auto_steps, buffers = _chip_defaults()
    if vmem_limit_bytes is None:
        vmem_limit_bytes = auto_limit
    if min_grid_steps is None:
        min_grid_steps = auto_steps

    # Smoothing targets are B-major: rows [b*R, (b+1)*R) belong to sample b,
    # matching torch.cat over per-sample converter.encode outputs paired with
    # preds.repeat(1, R, 1, 1).
    tgt_m = target.astype(jnp.int32).reshape(B, 1, T)
    tgt_s = text_smooth.astype(jnp.int32).reshape(B, R, T)

    # --- pad T to a multiple of 8 (sublane); padded tokens carry ignore_index.
    Tp = ((T + 7) // 8) * 8
    if Tp != T:
        preds = jnp.pad(preds, ((0, 0), (0, Tp - T), (0, 0)))
        tgt_m = jnp.pad(tgt_m, ((0, 0), (0, 0), (0, Tp - T)),
                        constant_values=ignore_index)
        tgt_s = jnp.pad(tgt_s, ((0, 0), (0, 0), (0, Tp - T)),
                        constant_values=ignore_index)

    # --- pad C to a multiple of 128 (lane-dense vregs).  A large negative pad
    # keeps log-sum-exp exact (exp(-1e30) == 0); targets are always < original C
    # so padded class lanes are never selected.
    Cp = ((C + 127) // 128) * 128
    if Cp != C:
        preds = jnp.pad(preds, ((0, 0), (0, 0), (0, Cp - C)),
                        constant_values=-1e30)

    # --- samples per grid step from the real VMEM footprint: double-buffered
    # inputs plus in-kernel f32 temporaries (upcast logits, exp intermediate,
    # counts accumulator, where-select temp).
    itemsize = preds.dtype.itemsize
    per_sample = (2 * (Tp * Cp * itemsize + Tp * 4 * (R + 1))  # 2x-buffered inputs
                  + 4 * Tp * Cp * 4)                           # f32 temporaries
    budget = int(0.75 * vmem_limit_bytes)                      # headroom for output/misc
    bb = max(1, budget // per_sample)
    # Keep at least `min_grid_steps` steps so megacore sharding (v7x's 2nd TC)
    # and DMA/compute pipelining have work to overlap.
    if B >= min_grid_steps:
        bb = min(bb, -(-B // min_grid_steps))
    bb = min(bb, B)
    Bp = -(-B // bb) * bb
    if Bp != B:
        preds = jnp.pad(preds, ((0, Bp - B), (0, 0), (0, 0)))
        tgt_m = jnp.pad(tgt_m, ((0, Bp - B), (0, 0), (0, 0)),
                        constant_values=ignore_index)
        tgt_s = jnp.pad(tgt_s, ((0, Bp - B), (0, 0), (0, 0)),
                        constant_values=ignore_index)
    grid = Bp // bb

    kernel = functools.partial(_fused_ce_kernel,
                               ignore_index=ignore_index, num_smooth=R)

    logits_spec = pl.BlockSpec((bb, Tp, Cp), lambda i: (i, 0, 0))
    if buffers > 2 and grid >= buffers:
        try:  # deeper logits pipelining where the kernel is closest to mem-bound
            logits_spec = pl.BlockSpec((bb, Tp, Cp), lambda i: (i, 0, 0),
                                       pipeline_mode=pl.Buffered(buffers))
        except Exception:
            pass

    flops = Bp * Tp * Cp * (7 + 3 * R)
    transcendentals = Bp * Tp * (Cp + 1)
    bytes_accessed = (Bp * Tp * Cp * itemsize
                      + Bp * Tp * 4 * (R + 1) + grid * 8 * 128 * 4)

    partials = pl.pallas_call(
        kernel,
        out_shape=jax.ShapeDtypeStruct((grid, 8, 128), jnp.float32),
        grid_spec=pltpu.PrefetchScalarGridSpec(
            num_scalar_prefetch=0,
            grid=(grid,),
            in_specs=[
                logits_spec,                                      # logits
                pl.BlockSpec((bb, 1, Tp), lambda i: (i, 0, 0)),   # master targets
                pl.BlockSpec((bb, R, Tp), lambda i: (i, 0, 0)),   # smoothing targets
            ],
            out_specs=pl.BlockSpec((1, 8, 128), lambda i: (i, 0, 0)),
        ),
        compiler_params=pltpu.CompilerParams(
            dimension_semantics=("parallel",),
            vmem_limit_bytes=int(vmem_limit_bytes)),
        cost_estimate=pl.CostEstimate(
            flops=int(flops),
            transcendentals=int(transcendentals),
            bytes_accessed=int(bytes_accessed)),
    )(preds, tgt_m, tgt_s)

    sum_m = jnp.sum(partials[:, 0, 0])
    cnt_m = jnp.sum(partials[:, 1, 0])
    sum_s = jnp.sum(partials[:, 2, 0])
    cnt_s = jnp.sum(partials[:, 3, 0])

    # NOTE: torch CrossEntropyLoss returns NaN when every token is ignored; we
    # guard with max(cnt, 1) instead (documented semantic deviation).
    loss_master = sum_m / jnp.maximum(cnt_m, 1.0)
    loss_smooth = sum_s / jnp.maximum(cnt_s, 1.0)
    return (1.0 - alpha) * loss_master + alpha * loss_smooth


# ----------------------------------------------------------------------------- reference
def _ce_mean_ref(logits, targets, ignore_index):
    logits = logits.reshape(-1, logits.shape[-1]).astype(jnp.float32)
    targets = targets.reshape(-1)
    logp = jax.nn.log_softmax(logits, axis=-1)
    nll = -jnp.take_along_axis(logp, targets[:, None], axis=-1)[:, 0]
    valid = targets != ignore_index
    return jnp.sum(jnp.where(valid, nll, 0.0)) / jnp.maximum(jnp.sum(valid), 1)


def _loss_ref(preds, target, text_smooth, alpha, ignore_index):
    B, T, C = preds.shape
    R = text_smooth.shape[0] // B
    lm = _ce_mean_ref(preds, target, ignore_index)
    preds_rep = jnp.broadcast_to(preds[:, None], (B, R, T, C))
    ls = _ce_mean_ref(preds_rep, text_smooth, ignore_index)
    return (1.0 - alpha) * lm + alpha * ls


# ----------------------------------------------------------------------------- main
if __name__ == "__main__":
    B, T, C = 2, 8, 32          # batch, seq length, num classes (charset size)
    R = 6                       # 1 visual string + 5 semantic strings per sample
    alpha = 0.3
    ignore_index = 0

    key = jax.random.PRNGKey(0)
    k_preds, k_tgt, k_txt = jax.random.split(key, 3)

    preds = jax.random.normal(k_preds, (B, T, C), dtype=jnp.float32)
    target = jax.random.randint(k_tgt, (B, T), 0, C, dtype=jnp.int32)

    # TODO(synk): converter.encode / semantic-dict string assembly has no tensor
    # equivalent; we directly synthesize the encoded smoothing tokens (with a GO
    # token column that the module strips via text[:, 1:]).
    text_full = jax.random.randint(k_txt, (B * R, T + 1), 0, C, dtype=jnp.int32)
    text_smooth = text_full[:, 1:]                                   # (B*R, T)

    loss_fn = jax.jit(functools.partial(
        sequence_smooth_loss_v10, alpha=alpha, ignore_index=ignore_index))
    loss = loss_fn(preds, target, text_smooth)
    loss = jax.block_until_ready(loss)

    ref = _loss_ref(preds, target, text_smooth, alpha, ignore_index)
    assert jnp.allclose(loss, ref, rtol=1e-5, atol=1e-5), (loss, ref)

    print("KERNEL_OK")
</pallas_src>

<mosaic_0001>
module attributes {stable_mosaic.version = 11 : i64} {
  func.func @_fused_ce_kernel(%arg0: i32, %arg1: memref<1x8x128xf32, #tpu.memory_space<vmem>>, %arg2: memref<1x1x8xi32, #tpu.memory_space<vmem>>, %arg3: memref<1x6x8xi32, #tpu.memory_space<vmem>>, %arg4: memref<1x8x128xf32, #tpu.memory_space<vmem>>) attributes {dimension_semantics = [#tpu.dimension_semantics<parallel>], iteration_bounds = array<i64: 2>, scalar_prefetch = 0 : i64, scratch_operands = 0 : i64, tpu.core_type = #tpu.core_type<tc>, window_params = [{transform_indices = @transform_0, window_bounds = array<i64: 1, 8, 128>}, {transform_indices = @transform_1, window_bounds = array<i64: 1, 1, 8>}, {transform_indices = @transform_2, window_bounds = array<i64: 1, 6, 8>}, {transform_indices = @transform_3, window_bounds = array<i64: 1, 8, 128>}]} {
    %c0 = arith.constant 0 : index
    %c0_0 = arith.constant 0 : index
    %c0_1 = arith.constant 0 : index
    %0 = vector.load %arg1[%c0, %c0_0, %c0_1] : memref<1x8x128xf32, #tpu.memory_space<vmem>>, vector<1x8x128xf32>
    %1 = vector.shape_cast %0 : vector<1x8x128xf32> to vector<8x128xf32>
    %cst = arith.constant dense<0xFF800000> : vector<8xf32>
    %2 = vector.multi_reduction <maximumf>, %1, %cst [1] : vector<8x128xf32> to vector<8xf32>
    %3 = vector.shape_cast %2 : vector<8xf32> to vector<8x1xf32>
    %4 = vector.broadcast %3 : vector<8x1xf32> to vector<8x128xf32>
    %5 = arith.subf %1, %4 : vector<8x128xf32>
    %6 = math.exp %5 : vector<8x128xf32>
    %cst_2 = arith.constant dense<0.000000e+00> : vector<8xf32>
    %7 = vector.multi_reduction <add>, %6, %cst_2 [1] : vector<8x128xf32> to vector<8xf32>
    %8 = vector.shape_cast %7 : vector<8xf32> to vector<8x1xf32>
    %9 = math.log %8 : vector<8x1xf32>
    %10 = arith.addf %9, %3 : vector<8x1xf32>
    %11 = tpu.iota {dimensions = array<i32: 1>} : vector<1x128xi32>
    %c0_3 = arith.constant 0 : index
    %c0_4 = arith.constant 0 : index
    %c0_5 = arith.constant 0 : index
    %12 = vector.load %arg2[%c0_3, %c0_4, %c0_5] : memref<1x1x8xi32, #tpu.memory_space<vmem>>, vector<1x1x8xi32>
    %13 = vector.shape_cast %12 : vector<1x1x8xi32> to vector<8x1xi32>
    %c0_i32 = arith.constant 0 : i32
    %14 = vector.broadcast %c0_i32 : i32 to vector<8x1xi32>
    %15 = arith.cmpi ne, %13, %14 : vector<8x1xi32>
    %16 = arith.extui %15 : vector<8x1xi1> to vector<8x1xi32>
    %17 = arith.sitofp %16 : vector<8x1xi32> to vector<8x1xf32>
    %18 = vector.broadcast %11 : vector<1x128xi32> to vector<8x128xi32>
    %19 = vector.broadcast %13 : vector<8x1xi32> to vector<8x128xi32>
    %20 = arith.cmpi eq, %18, %19 : vector<8x128xi32>
    %cst_6 = arith.constant 0.000000e+00 : f32
    %21 = vector.broadcast %cst_6 : f32 to vector<8x128xf32>
    %22 = arith.select %20, %1, %21 : vector<8x128xi1>, vector<8x128xf32>
    %cst_7 = arith.constant dense<0.000000e+00> : vector<8xf32>
    %23 = vector.multi_reduction <add>, %22, %cst_7 [1] : vector<8x128xf32> to vector<8xf32>
    %24 = vector.shape_cast %23 : vector<8xf32> to vector<8x1xf32>
    %25 = arith.subf %10, %24 : vector<8x1xf32>
    %26 = arith.mulf %25, %17 : vector<8x1xf32>
    %27 = vector.shape_cast %26 : vector<8x1xf32> to vector<1x8x1xf32>
    %cst_8 = arith.constant dense<0.000000e+00> : vector<1xf32>
    %28 = vector.multi_reduction <add>, %27, %cst_8 [1, 2] : vector<1x8x1xf32> to vector<1xf32>
    %29 = vector.shape_cast %28 : vector<1xf32> to vector<1x1x1xf32>
    %30 = vector.extract %29[0, 0, 0] : f32 from vector<1x1x1xf32>
    %31 = vector.shape_cast %17 : vector<8x1xf32> to vector<1x8x1xf32>
    %cst_9 = arith.constant dense<0.000000e+00> : vector<1xf32>
    %32 = vector.multi_reduction <add>, %31, %cst_9 [1, 2] : vector<1x8x1xf32> to vector<1xf32>
    %33 = vector.shape_cast %32 : vector<1xf32> to vector<1x1x1xf32>
    %34 = vector.extract %33[0, 0, 0] : f32 from vector<1x1x1xf32>
    %cst_10 = arith.constant 0.000000e+00 : f32
    %35 = vector.broadcast %cst_10 : f32 to vector<8x128xf32>
    %cst_11 = arith.constant 0.000000e+00 : f32
    %36 = vector.broadcast %cst_11 : f32 to vector<8x1xf32>
    %c0_12 = arith.constant 0 : index
    %c0_13 = arith.constant 0 : index
    %c0_14 = arith.constant 0 : index
    %37 = vector.load %arg3[%c0_12, %c0_13, %c0_14] : memref<1x6x8xi32, #tpu.memory_space<vmem>>, vector<1x1x8xi32>
    %38 = vector.shape_cast %37 : vector<1x1x8xi32> to vector<1x8xi32>
    %39 = vector.shape_cast %38 : vector<1x8xi32> to vector<8x1xi32>
    %c0_i32_15 = arith.constant 0 : i32
    %40 = vector.broadcast %c0_i32_15 : i32 to vector<8x1xi32>
    %41 = arith.cmpi ne, %39, %40 : vector<8x1xi32>
    %42 = vector.broadcast %11 : vector<1x128xi32> to vector<8x128xi32>
    %43 = vector.broadcast %39 : vector<8x1xi32> to vector<8x128xi32>
    %44 = arith.cmpi eq, %42, %43 : vector<8x128xi32>
    %45 = vector.broadcast %41 : vector<8x1xi1> to vector<8x128xi1>
    %46 = arith.andi %44, %45 : vector<8x128xi1>
    %cst_16 = arith.constant 1.000000e+00 : f32
    %cst_17 = arith.constant 0.000000e+00 : f32
    %47 = vector.broadcast %cst_16 : f32 to vector<8x128xf32>
    %48 = vector.broadcast %cst_17 : f32 to vector<8x128xf32>
    %49 = arith.select %46, %47, %48 : vector<8x128xi1>, vector<8x128xf32>
    %50 = arith.addf %35, %49 : vector<8x128xf32>
    %51 = arith.extui %41 : vector<8x1xi1> to vector<8x1xi32>
    %52 = arith.sitofp %51 : vector<8x1xi32> to vector<8x1xf32>
    %53 = arith.addf %36, %52 : vector<8x1xf32>
    %c0_18 = arith.constant 0 : index
    %c1 = arith.constant 1 : index
    %c0_19 = arith.constant 0 : index
    %54 = vector.load %arg3[%c0_18, %c1, %c0_19] : memref<1x6x8xi32, #tpu.memory_space<vmem>>, vector<1x1x8xi32>
    %55 = vector.shape_cast %54 : vector<1x1x8xi32> to vector<1x8xi32>
    %56 = vector.shape_cast %55 : vector<1x8xi32> to vector<8x1xi32>
    %c0_i32_20 = arith.constant 0 : i32
    %57 = vector.broadcast %c0_i32_20 : i32 to vector<8x1xi32>
    %58 = arith.cmpi ne, %56, %57 : vector<8x1xi32>
    %59 = vector.broadcast %11 : vector<1x128xi32> to vector<8x128xi32>
    %60 = vector.broadcast %56 : vector<8x1xi32> to vector<8x128xi32>
    %61 = arith.cmpi eq, %59, %60 : vector<8x128xi32>
    %62 = vector.broadcast %58 : vector<8x1xi1> to vector<8x128xi1>
    %63 = arith.andi %61, %62 : vector<8x128xi1>
    %cst_21 = arith.constant 1.000000e+00 : f32
    %cst_22 = arith.constant 0.000000e+00 : f32
    %64 = vector.broadcast %cst_21 : f32 to vector<8x128xf32>
    %65 = vector.broadcast %cst_22 : f32 to vector<8x128xf32>
    %66 = arith.select %63, %64, %65 : vector<8x128xi1>, vector<8x128xf32>
    %67 = arith.addf %50, %66 : vector<8x128xf32>
    %68 = arith.extui %58 : vector<8x1xi1> to vector<8x1xi32>
    %69 = arith.sitofp %68 : vector<8x1xi32> to vector<8x1xf32>
    %70 = arith.addf %53, %69 : vector<8x1xf32>
    %c0_23 = arith.constant 0 : index
    %c2 = arith.constant 2 : index
    %c0_24 = arith.constant 0 : index
    %71 = vector.load %arg3[%c0_23, %c2, %c0_24] : memref<1x6x8xi32, #tpu.memory_space<vmem>>, vector<1x1x8xi32>
    %72 = vector.shape_cast %71 : vector<1x1x8xi32> to vector<1x8xi32>
    %73 = vector.shape_cast %72 : vector<1x8xi32> to vector<8x1xi32>
    %c0_i32_25 = arith.constant 0 : i32
    %74 = vector.broadcast %c0_i32_25 : i32 to vector<8x1xi32>
    %75 = arith.cmpi ne, %73, %74 : vector<8x1xi32>
    %76 = vector.broadcast %11 : vector<1x128xi32> to vector<8x128xi32>
    %77 = vector.broadcast %73 : vector<8x1xi32> to vector<8x128xi32>
    %78 = arith.cmpi eq, %76, %77 : vector<8x128xi32>
    %79 = vector.broadcast %75 : vector<8x1xi1> to vector<8x128xi1>
    %80 = arith.andi %78, %79 : vector<8x128xi1>
    %cst_26 = arith.constant 1.000000e+00 : f32
    %cst_27 = arith.constant 0.000000e+00 : f32
    %81 = vector.broadcast %cst_26 : f32 to vector<8x128xf32>
    %82 = vector.broadcast %cst_27 : f32 to vector<8x128xf32>
    %83 = arith.select %80, %81, %82 : vector<8x128xi1>, vector<8x128xf32>
    %84 = arith.addf %67, %83 : vector<8x128xf32>
    %85 = arith.extui %75 : vector<8x1xi1> to vector<8x1xi32>
    %86 = arith.sitofp %85 : vector<8x1xi32> to vector<8x1xf32>
    %87 = arith.addf %70, %86 : vector<8x1xf32>
    %c0_28 = arith.constant 0 : index
    %c3 = arith.constant 3 : index
    %c0_29 = arith.constant 0 : index
    %88 = vector.load %arg3[%c0_28, %c3, %c0_29] : memref<1x6x8xi32, #tpu.memory_space<vmem>>, vector<1x1x8xi32>
    %89 = vector.shape_cast %88 : vector<1x1x8xi32> to vector<1x8xi32>
    %90 = vector.shape_cast %89 : vector<1x8xi32> to vector<8x1xi32>
    %c0_i32_30 = arith.constant 0 : i32
    %91 = vector.broadcast %c0_i32_30 : i32 to vector<8x1xi32>
    %92 = arith.cmpi ne, %90, %91 : vector<8x1xi32>
    %93 = vector.broadcast %11 : vector<1x128xi32> to vector<8x128xi32>
    %94 = vector.broadcast %90 : vector<8x1xi32> to vector<8x128xi32>
    %95 = arith.cmpi eq, %93, %94 : vector<8x128xi32>
    %96 = vector.broadcast %92 : vector<8x1xi1> to vector<8x128xi1>
    %97 = arith.andi %95, %96 : vector<8x128xi1>
    %cst_31 = arith.constant 1.000000e+00 : f32
    %cst_32 = arith.constant 0.000000e+00 : f32
    %98 = vector.broadcast %cst_31 : f32 to vector<8x128xf32>
    %99 = vector.broadcast %cst_32 : f32 to vector<8x128xf32>
    %100 = arith.select %97, %98, %99 : vector<8x128xi1>, vector<8x128xf32>
    %101 = arith.addf %84, %100 : vector<8x128xf32>
    %102 = arith.extui %92 : vector<8x1xi1> to vector<8x1xi32>
    %103 = arith.sitofp %102 : vector<8x1xi32> to vector<8x1xf32>
    %104 = arith.addf %87, %103 : vector<8x1xf32>
    %c0_33 = arith.constant 0 : index
    %c4 = arith.constant 4 : index
    %c0_34 = arith.constant 0 : index
    %105 = vector.load %arg3[%c0_33, %c4, %c0_34] : memref<1x6x8xi32, #tpu.memory_space<vmem>>, vector<1x1x8xi32>
    %106 = vector.shape_cast %105 : vector<1x1x8xi32> to vector<1x8xi32>
    %107 = vector.shape_cast %106 : vector<1x8xi32> to vector<8x1xi32>
    %c0_i32_35 = arith.constant 0 : i32
    %108 = vector.broadcast %c0_i32_35 : i32 to vector<8x1xi32>
    %109 = arith.cmpi ne, %107, %108 : vector<8x1xi32>
    %110 = vector.broadcast %11 : vector<1x128xi32> to vector<8x128xi32>
    %111 = vector.broadcast %107 : vector<8x1xi32> to vector<8x128xi32>
    %112 = arith.cmpi eq, %110, %111 : vector<8x128xi32>
    %113 = vector.broadcast %109 : vector<8x1xi1> to vector<8x128xi1>
    %114 = arith.andi %112, %113 : vector<8x128xi1>
    %cst_36 = arith.constant 1.000000e+00 : f32
    %cst_37 = arith.constant 0.000000e+00 : f32
    %115 = vector.broadcast %cst_36 : f32 to vector<8x128xf32>
    %116 = vector.broadcast %cst_37 : f32 to vector<8x128xf32>
    %117 = arith.select %114, %115, %116 : vector<8x128xi1>, vector<8x128xf32>
    %118 = arith.addf %101, %117 : vector<8x128xf32>
    %119 = arith.extui %109 : vector<8x1xi1> to vector<8x1xi32>
    %120 = arith.sitofp %119 : vector<8x1xi32> to vector<8x1xf32>
    %121 = arith.addf %104, %120 : vector<8x1xf32>
    %c0_38 = arith.constant 0 : index
    %c5 = arith.constant 5 : index
    %c0_39 = arith.constant 0 : index
    %122 = vector.load %arg3[%c0_38, %c5, %c0_39] : memref<1x6x8xi32, #tpu.memory_space<vmem>>, vector<1x1x8xi32>
    %123 = vector.shape_cast %122 : vector<1x1x8xi32> to vector<1x8xi32>
    %124 = vector.shape_cast %123 : vector<1x8xi32> to vector<8x1xi32>
    %c0_i32_40 = arith.constant 0 : i32
    %125 = vector.broadcast %c0_i32_40 : i32 to vector<8x1xi32>
    %126 = arith.cmpi ne, %124, %125 : vector<8x1xi32>
    %127 = vector.broadcast %11 : vector<1x128xi32> to vector<8x128xi32>
    %128 = vector.broadcast %124 : vector<8x1xi32> to vector<8x128xi32>
    %129 = arith.cmpi eq, %127, %128 : vector<8x128xi32>
    %130 = vector.broadcast %126 : vector<8x1xi1> to vector<8x128xi1>
    %131 = arith.andi %129, %130 : vector<8x128xi1>
    %cst_41 = arith.constant 1.000000e+00 : f32
    %cst_42 = arith.constant 0.000000e+00 : f32
    %132 = vector.broadcast %cst_41 : f32 to vector<8x128xf32>
    %133 = vector.broadcast %cst_42 : f32 to vector<8x128xf32>
    %134 = arith.select %131, %132, %133 : vector<8x128xi1>, vector<8x128xf32>
    %135 = arith.addf %118, %134 : vector<8x128xf32>
    %136 = arith.extui %126 : vector<8x1xi1> to vector<8x1xi32>
    %137 = arith.sitofp %136 : vector<8x1xi32> to vector<8x1xf32>
    %138 = arith.addf %121, %137 : vector<8x1xf32>
    %139 = arith.mulf %10, %138 : vector<8x1xf32>
    %140 = vector.shape_cast %139 : vector<8x1xf32> to vector<1x8x1xf32>
    %cst_43 = arith.constant dense<0.000000e+00> : vector<1xf32>
    %141 = vector.multi_reduction <add>, %140, %cst_43 [1, 2] : vector<1x8x1xf32> to vector<1xf32>
    %142 = vector.shape_cast %141 : vector<1xf32> to vector<1x1x1xf32>
    %143 = vector.extract %142[0, 0, 0] : f32 from vector<1x1x1xf32>
    %144 = arith.mulf %1, %135 : vector<8x128xf32>
    %145 = vector.shape_cast %144 : vector<8x128xf32> to vector<1x8x128xf32>
    %cst_44 = arith.constant dense<0.000000e+00> : vector<1xf32>
    %146 = vector.multi_reduction <add>, %145, %cst_44 [1, 2] : vector<1x8x128xf32> to vector<1xf32>
    %147 = vector.shape_cast %146 : vector<1xf32> to vector<1x1x1xf32>
    %148 = vector.extract %147[0, 0, 0] : f32 from vector<1x1x1xf32>
    %149 = arith.subf %143, %148 : f32
    %150 = vector.shape_cast %138 : vector<8x1xf32> to vector<1x8x1xf32>
    %cst_45 = arith.constant dense<0.000000e+00> : vector<1xf32>
    %151 = vector.multi_reduction <add>, %150, %cst_45 [1, 2] : vector<1x8x1xf32> to vector<1xf32>
    %152 = vector.shape_cast %151 : vector<1xf32> to vector<1x1x1xf32>
    %153 = vector.extract %152[0, 0, 0] : f32 from vector<1x1x1xf32>
    %154 = tpu.iota {dimensions = array<i32: 0>} : vector<8x128xi32>
    %c0_i32_46 = arith.constant 0 : i32
    %155 = vector.broadcast %c0_i32_46 : i32 to vector<8x128xi32>
    %156 = arith.cmpi eq, %154, %155 : vector<8x128xi32>
    %c1_i32 = arith.constant 1 : i32
    %157 = vector.broadcast %c1_i32 : i32 to vector<8x128xi32>
    %158 = arith.cmpi eq, %154, %157 : vector<8x128xi32>
    %c2_i32 = arith.constant 2 : i32
    %159 = vector.broadcast %c2_i32 : i32 to vector<8x128xi32>
    %160 = arith.cmpi eq, %154, %159 : vector<8x128xi32>
    %c3_i32 = arith.constant 3 : i32
    %161 = vector.broadcast %c3_i32 : i32 to vector<8x128xi32>
    %162 = arith.cmpi eq, %154, %161 : vector<8x128xi32>
    %cst_47 = arith.constant 0.000000e+00 : f32
    %163 = vector.broadcast %153 : f32 to vector<8x128xf32>
    %164 = vector.broadcast %cst_47 : f32 to vector<8x128xf32>
    %165 = arith.select %162, %163, %164 : vector<8x128xi1>, vector<8x128xf32>
    %166 = vector.broadcast %149 : f32 to vector<8x128xf32>
    %167 = arith.select %160, %166, %165 : vector<8x128xi1>, vector<8x128xf32>
    %168 = vector.broadcast %34 : f32 to vector<8x128xf32>
    %169 = arith.select %158, %168, %167 : vector<8x128xi1>, vector<8x128xf32>
    %170 = vector.broadcast %30 : f32 to vector<8x128xf32>
    %171 = arith.select %156, %170, %169 : vector<8x128xi1>, vector<8x128xf32>
    %172 = vector.shape_cast %171 : vector<8x128xf32> to vector<1x8x128xf32>
    %c0_48 = arith.constant 0 : index
    %c0_49 = arith.constant 0 : index
    %c0_50 = arith.constant 0 : index
    %173 = vector.load %arg4[%c0_48, %c0_49, %c0_50] : memref<1x8x128xf32, #tpu.memory_space<vmem>>, vector<1x8x128xf32>
    tpu.vector_store %arg4[%c0_48, %c0_49, %c0_50], %172 {strides = array<i32>} : memref<1x8x128xf32, #tpu.memory_space<vmem>>, vector<1x8x128xf32>,
    return
  }
  func.func @transform_0(%arg0: i32) -> (i32, i32, i32) {
    %c0_i32 = arith.constant 0 : i32
    %c0_i32_0 = arith.constant 0 : i32
    %c0_i32_1 = arith.constant 0 : i32
    return %arg0, %c0_i32, %c0_i32_0 : i32, i32, i32
  }
  func.func @transform_1(%arg0: i32) -> (i32, i32, i32) {
    %c0_i32 = arith.constant 0 : i32
    %c0_i32_0 = arith.constant 0 : i32
    %c0_i32_1 = arith.constant 0 : i32
    return %arg0, %c0_i32, %c0_i32_0 : i32, i32, i32
  }
  func.func @transform_2(%arg0: i32) -> (i32, i32, i32) {
    %c0_i32 = arith.constant 0 : i32
    %c0_i32_0 = arith.constant 0 : i32
    %c0_i32_1 = arith.constant 0 : i32
    return %arg0, %c0_i32, %c0_i32_0 : i32, i32, i32
  }
  func.func @transform_3(%arg0: i32) -> (i32, i32, i32) {
    %c0_i32 = arith.constant 0 : i32
    %c0_i32_0 = arith.constant 0 : i32
    %c0_i32_1 = arith.constant 0 : i32
    return %arg0, %c0_i32, %c0_i32_0 : i32, i32, i32
  }
}

</mosaic_0001>

<bundles_post_ra>
// kernel: sequence_smooth_loss_v10.1
= control target key start
LH: loop header
LB: loop body
LE: loop exit
PB: predicated region body
PF: predicated region fallthrough
CT: control target
= control target key end

     0   :  { %s550_s12 = smov 0   ;;  %s626_s0 = inlined_call_operand.vmem [shape: f32[2,8,128], index: 0, kind: input, shape index: {}]   ;;  %s627_s1 = inlined_call_operand.vmem [shape: s32[2,1,8], index: 1, kind: input, shape index: {}]   ;;  %s628_s2 = inlined_call_operand.vmem [shape: s32[2,6,8], index: 2, kind: input, shape index: {}]   ;;  %s629_s3 = inlined_call_operand.vmem [shape: f32[2,8,128], index: 3, kind: output, shape index: {}]  }
   0x1 LB: > { %s471_s13 = sadd.s32 4294967295, %s527_s12   ;;  %p475_p0 = scmp.ge.s32.totalorder %s527_s12, 1  ;;  %s527_s12 = sphi %s550_s12, %s13_s12  }
   0x2   : > { %p153_p1 = scmp.lt.s32.totalorder %s527_s12, 3 }
   0x4   : > { %p154_p2 = pnand %p475_p0, %p153_p1 }
   0x5   : > { %p182_p3 = scmp.lt.s32.totalorder (!%p154_p2), %s471_s13, 1 }
   0x6   : > { %157 = sbr.rel (%p154_p2) target bundleno = 524 (0x20c), region = 32 }
   0xb   : > { %v208_v0 = vlaneseq  ;;  %s631_s13 = smov (!%p182_p3, %s471_s13), 1  ;;  %vm227_vm0 = vcmask 7168   ;;  %v529_v13 = vmov 0.0  }
   0xc   : > { %s560_s14 = sshll.u32 %s631_s13, 3  ;;  %s188_s17 = scalar_lea.vmem %s627_s1, %s631_s13 }
   0xd   : > { %v558_v1 = vshrl.u32 %v208_v0, 7  ;;  %s185_s20 = scalar_lea.vmem %s626_s0, %s560_s14  ;;  %s192_s23 = scalar_lea.vmem %s628_s2, %s560_s14  ;;  %v510_v3 = vld [vmem:[%s188_s17] ss:$0 sm:$0xff]  ;;  %v209_v18 = vand.u32 127, %v208_v0 }
   0xe   : > { %v576_v2 = vld [vmem:[%s185_s20] sm:$0xff]  ;;  %s196_s5 = scalar_lea.vmem %s629_s3, %s560_s14 }
   0xf   : > { %507 = vset.pattern.permute.xlu0 %v558_v1  ;;  %509 = vset.pattern.permute.xlu2 %v558_v1  ;;  %v511_v4 = vld [vmem:[%s192_s23 + $0x1] ss:$0 sm:$0xff]  ;;  %v513_v8 = vld [vmem:[%s192_s23 + $0x2] ss:$0 sm:$0xff]  ;;  %v514_v10 = vld [vmem:[%s192_s23 + $0x3] ss:$0 sm:$0xff] }
  0x10   : > { %508 = vset.pattern.permute.xlu1 %v558_v1  ;;  %198 = vmax.xlane.f32.xlu0 %v576_v2  ;;  %v515_v11 = vld [vmem:[%s192_s23 + $0x4] ss:$0 sm:$0xff]  ;;  %v516_v16 = vld [vmem:[%s192_s23 + $0x5] ss:$0 sm:$0xff]  ;;  %v512_v17 = vld [vmem:[%s192_s23] ss:$0 sm:$0xff] }
  0x17   : > { %271 = vperm.xlu2 %509, %v511_v4  }
  0x1f   : > { %288 = vperm.xlu2 %509, %v513_v8  }
  0x24   : > { %216 = vperm.xlu0 %507, %v510_v3  }
  0x27   : > { %305 = vperm.xlu2 %509, %v514_v10  }
  0x2f   : > { %322 = vperm.xlu2 %509, %v515_v11  }
  0x37   : > { %339 = vperm.xlu2 %509, %v516_v16  }
  0x71   : > { %v272_v20 = vpop.permute.xlu2 %271 }
  0x72   : > { %vm273_vm3 = vcmp.ne.s32.totalorder %v272_v20, 0  ;;  %vm274_vm9 = vcmp.eq.s32.totalorder %v209_v18, %v272_v20 }
  0x73   : > { %v481_v25 = vsel %vm273_vm3, 1.0, %v529_v13  ;;  %vm277_vm11 = vmand %vm274_vm9, %vm273_vm3 }
  0x74   : > { %v278_v44 = vsel %vm277_vm11, 1.0, %v529_v13 }
  0x79   : > { %v289_v21 = vpop.permute.xlu2 %288 }
  0x7a   : > { %vm290_vm4 = vcmp.ne.s32.totalorder %v289_v21, 0  ;;  %vm291_vm13 = vcmp.eq.s32.totalorder %v209_v18, %v289_v21 }
  0x7b   : > { %v482_v27 = vsel %vm290_vm4, 1.0, %v529_v13  ;;  %vm294_vm14 = vmand %vm291_vm13, %vm290_vm4 }
  0x7c   : > { %v295_v47 = vsel %vm294_vm14, 1.0, %v529_v13 }
  0x81   : > { %v306_v22 = vpop.permute.xlu2 %305 }
  0x82   : > { %vm307_vm5 = vcmp.ne.s32.totalorder %v306_v22, 0  ;;  %vm308_vm15 = vcmp.eq.s32.totalorder %v209_v18, %v306_v22 }
  0x83   : > { %v199_v5 = vpop.xlane.xlu0 %198  ;;  %v483_v32 = vsel %vm307_vm5, 1.0, %v529_v13 }
  0x84   : > { %v200_v6 = vsub.f32 %v576_v2, %v199_v5 }
  0x86   : > { %v201_v7 = vmul.f32 1.442695, %v200_v6 }
  0x88   : > { %517 = vpow2.f32 %v201_v7 }
  0x89   : > { %v323_v24 = vpop.permute.xlu2 %322 }
  0x8a   : > { %vm324_vm7 = vcmp.ne.s32.totalorder %v323_v24, 0 }
  0x8b   : > { %v484_v34 = vsel %vm324_vm7, 1.0, %v529_v13 }
  0x8e   : > { %v518_v9 = vpop.eup %517 }
  0x8f   : > { %203 = vadd.xlane.f32.xlu1 %v518_v9 }
  0x91   : > { %v340_v29 = vpop.permute.xlu2 %339 }
  0x92   : > { %vm341_vm8 = vcmp.ne.s32.totalorder %v340_v29, 0 }
  0x93   : > { %v485_v37 = vsel %vm341_vm8, 1.0, %v529_v13 }
  0x96   : > { %v217_v12 = vpop.permute.xlu0 %216 }
  0x97   : > { %vm218_vm1 = vcmp.ne.s32.totalorder %v217_v12, 0  ;;  %vm221_vm2 = vcmp.eq.s32.totalorder %v209_v18, %v217_v12 }
  0x98   : > { %v581_v14 = vsel %vm218_vm1, 1.0, %v529_v13  ;;  %v222_v19 = vsel %vm221_vm2, %v576_v2, 0.0  ;;  %vm311_vm1 = vmand %vm308_vm15, %vm307_vm5  ;;  %vm325_vm2 = vcmp.eq.s32.totalorder %v209_v18, %v323_v24  ;;  %vm386_vm5 = vcmp.eq.s32.totalorder %v558_v1, 2 }
  0x99   : > { %v238_v15 = vsel %vm227_vm0, %v581_v14, 0.0  ;;  %v312_v49 = vsel %vm311_vm1, 1.0, %v529_v13  ;;  %vm328_vm3 = vmand %vm325_vm2, %vm324_vm7  ;;  %vm385_vm7 = vcmp.eq.s32.totalorder %v558_v1, 1 }
  0x9a   : > { %239 = vadd.xlane.f32.xlu0 %v238_v15  ;;  %v329_v52 = vsel %vm328_vm3, 1.0, %v529_v13 }
  0xa8   : > { %254 = vperm.xlu1 %508, %v512_v17  }
  0xd2   : > { %223 = vadd.xlane.f32.xlu1 %v222_v19 }
 0x102   : > { %v204_v23 = vpop.xlane.xlu1 %203 }
 0x103   : > { %519 = vlog2.f32 %v204_v23 }
 0x109   : > { %v520_v31 = vpop.eup %519 }
 0x10a   : > { %v206_v35 = vmul.f32 0.6931472, %v520_v31 }
 0x10c   : > { %v207_v39 = vadd.f32 %v206_v35, %v199_v5 }
 0x10d   : > { %v240_v61 = vpop.xlane.xlu0 %239 }
 0x10e   : > { %v241_v62 = vrot.slane %v240_v61, 4 }
 0x110   : > { %v242_v0 = vadd.f32 %v241_v62, %v240_v61 }
 0x112   : > { %v243_v5 = vrot.slane %v242_v0, 2 }
 0x114   : > { %v244_v11 = vadd.f32 %v243_v5, %v242_v0 }
 0x116   : > { %v245_v17 = vrot.slane %v244_v11, 1 }
 0x118   : > { %v246_v24 = vadd.f32 %v245_v17, %v244_v11 }
 0x11a   : > { %v255_v26 = vpop.permute.xlu1 %254 }
 0x11b   : > { %vm256_vm6 = vcmp.ne.s32.totalorder %v255_v26, 0  ;;  %vm257_vm10 = vcmp.eq.s32.totalorder %v209_v18, %v255_v26 }
 0x11c   : > { %v480_v28 = vsel %vm256_vm6, 1.0, %v529_v13  ;;  %vm260_vm12 = vmand %vm257_vm10, %vm256_vm6  ;;  %vm342_vm6 = vcmp.eq.s32.totalorder %v209_v18, %v340_v29 }
 0x11d   : > { %v281_v30 = vadd.f32 %v481_v25, %v480_v28  ;;  %v261_v45 = vsel %vm260_vm12, 1.0, %v529_v13  ;;  %vm345_vm4 = vmand %vm342_vm6, %vm341_vm8  ;;  %vm384_vm8 = vcmp.eq.s32.totalorder %v558_v1, 0 }
 0x11e   : > { %v279_v46 = vadd.f32 %v278_v44, %v261_v45  ;;  %v346_v56 = vsel %vm345_vm4, 1.0, %v529_v13 }
 0x11f   : > { %v298_v33 = vadd.f32 %v482_v27, %v281_v30 }
 0x120   : > { %v296_v48 = vadd.f32 %v295_v47, %v279_v46 }
 0x121   : > { %v315_v36 = vadd.f32 %v483_v32, %v298_v33 }
 0x122   : > { %v313_v51 = vadd.f32 %v312_v49, %v296_v48 }
 0x123   : > { %v332_v38 = vadd.f32 %v484_v34, %v315_v36 }
 0x124   : > { %v330_v55 = vadd.f32 %v329_v52, %v313_v51 }
 0x125   : > { %v349_v40 = vadd.f32 %v485_v37, %v332_v38 }
 0x126   : > { %v347_v58 = vadd.f32 %v346_v56, %v330_v55 }
 0x127   : > { %v350_v41 = vmul.f32 %v349_v40, %v207_v39  ;;  %v372_v43 = vsel %vm227_vm0, %v349_v40, 0.0 }
 0x128   : > { %v361_v59 = vmul.f32 %v347_v58, %v576_v2 }
 0x129   : > { %v351_v42 = vsel %vm227_vm0, %v350_v41, 0.0 }
 0x12a   : > { %352 = vadd.xlane.f32.xlu1 %v351_v42 }
 0x132   : > { %373 = vadd.xlane.f32.xlu1 %v372_v43 }
 0x145   : > { %v224_v50 = vpop.xlane.xlu1 %223 }
 0x146   : > { %v225_v53 = vsub.f32 %v207_v39, %v224_v50 }
 0x148   : > { %v226_v54 = vmul.f32 %v581_v14, %v225_v53 }
 0x14a   : > { %v228_v57 = vsel %vm227_vm0, %v226_v54, 0.0  ;;  %vm387_vm0 = vcmp.eq.s32.totalorder %v558_v1, 3 }
 0x14b   : > { %229 = vadd.xlane.f32.xlu2 %v228_v57 }
 0x153   : > { %362 = vadd.xlane.f32.xlu2 %v361_v59 }
 0x19d   : > { %v353_v60 = vpop.xlane.xlu1 %352 }
 0x19e   : > { %v354_v63 = vrot.slane %v353_v60, 4 }
 0x1a0   : > { %v355_v3 = vadd.f32 %v354_v63, %v353_v60 }
 0x1a2   : > { %v356_v8 = vrot.slane %v355_v3, 2 }
 0x1a4   : > { %v357_v14 = vadd.f32 %v356_v8, %v355_v3 }
 0x1a5   : > { %v374_v4 = vpop.xlane.xlu1 %373 }
 0x1a6   : > { %v375_v6 = vrot.slane %v374_v4, 4  ;;  %v358_v20 = vrot.slane %v357_v14, 1 }
 0x1a8   : > { %v376_v12 = vadd.f32 %v375_v6, %v374_v4  ;;  %v359_v26 = vadd.f32 %v358_v20, %v357_v14 }
 0x1aa   : > { %v377_v2 = vrot.slane %v376_v12, 2 }
 0x1ac   : > { %v378_v23 = vadd.f32 %v377_v2, %v376_v12 }
 0x1ae   : > { %v379_v28 = vrot.slane %v378_v23, 1 }
 0x1b0   : > { %v380_v31 = vadd.f32 %v379_v28, %v378_v23 }
 0x1be   : > { %v230_v7 = vpop.xlane.xlu2 %229 }
 0x1bf   : > { %v231_v9 = vrot.slane %v230_v7, 4 }
 0x1c1   : > { %v232_v10 = vadd.f32 %v231_v9, %v230_v7 }
 0x1c3   : > { %v233_v13 = vrot.slane %v232_v10, 2 }
 0x1c5   : > { %v234_v15 = vadd.f32 %v233_v13, %v232_v10 }
 0x1c6   : > { %v363_v16 = vpop.xlane.xlu2 %362 }
 0x1c7   : > { %v364_v18 = vrot.slane %v363_v16, 4  ;;  %v235_v19 = vrot.slane %v234_v15, 1 }
 0x1c9   : > { %v365_v21 = vadd.f32 %v364_v18, %v363_v16  ;;  %v236_v22 = vadd.f32 %v235_v19, %v234_v15 }
 0x1cb   : > { %v366_v25 = vrot.slane %v365_v21, 2  ;;  %488 = vpush %v236_v22 }
 0x1cc   : > { %490 = vpush %v246_v24 }
 0x1cd   : > { %v367_v27 = vadd.f32 %v366_v25, %v365_v21  ;;  %492 = vpush %v359_v26 }
 0x1cf   : > { %v368_v29 = vrot.slane %v367_v27, 1 }
 0x1d1   : > { %v369_v30 = vadd.f32 %v368_v29, %v367_v27 }
 0x1d3   : > { %494 = vpush %v369_v30 }
 0x1d4   : > { %496 = vpush %v380_v31 }
 0x1fc   : > { %s489_s24 = spop %488 }
 0x1fd   : > { %s491_s25 = spop %490  ;;  %v394_v37 = vstv %s489_s24 }
 0x1fe   : > { %s493_s26 = spop %492  ;;  %v392_v35 = vstv %s491_s25 }
 0x204   : > { %s495_s27 = spop %494 }
 0x205   : > { %s371_s28 = ssub.f32 %s493_s26, %s495_s27  ;;  %s497_s29 = spop %496 }
 0x206   : > { %v388_v32 = vstv %s497_s29 }
 0x207   : > { %v390_v33 = vstv %s371_s28  ;;  %v389_v34 = vsel %vm387_vm0, %v388_v32, 0.0 }
 0x208   : > { %v391_v36 = vsel %vm386_vm5, %v390_v33, %v389_v34 }
 0x209   : > { %v393_v38 = vsel %vm385_vm7, %v392_v35, %v391_v36 }
 0x20a   : > { %v395_v39 = vsel %vm384_vm8, %v394_v37, %v393_v38 }
 0x20b   : > { %396 = vst [vmem:[%s196_s5] sm:$0xff] %v395_v39 }
 0x20c PF: > { %s13_s12 = sadd.s32 1, %s527_s12  }
 0x20d   : > { %p10_p4 = scmp.ge.s32.totalorder %s13_s12, 4  }
 0x20f   :  { %12 = sbr.rel (!%p10_p4) target bundleno = 1 (0x1), region = 68 }

</bundles_post_ra>
